<compile_context>
chip_gen: v7x
topology: tpu7x:2x2x1
jax: 0.10.0
libtpu: 0.0.40
codegen_flags: <defaults>
</compile_context>

<pallas_src>
import jax
import jax.numpy as jnp
from jax.experimental import pallas as pl
from jax.experimental.pallas import tpu as pltpu


def _round_up(x, m):
    return ((x + m - 1) // m) * m


def classification_head_kernel(x_ref, w1_ref, b1_ref, w2_ref, b2_ref, o_ref):
    # x_ref : (TN, H)   activation tile (native dtype: f32 or bf16)
    # w1_ref: (H, H)    dense weight, pre-transposed (in, out)
    # b1_ref: (1, H)
    # w2_ref: (H, Lp)   out_proj weight, pre-transposed (in, out), lane-padded
    # b2_ref: (1, Lp)
    # o_ref : (TN, Lp)
    x = x_ref[...]

    # dense: x @ W1 (weights already (in, out)) — f32 accumulation on the MXU.
    h = jnp.dot(x, w1_ref[...], preferred_element_type=jnp.float32)
    h = h + b1_ref[...].astype(jnp.float32)

    if x.dtype == jnp.bfloat16:
        # bf16 VPU/EUP path (v6e/v7x): halves EUP cost, shrinks the h temp, and
        # the second matmul consumes bf16 either way. (On v5e Mosaic widens.)
        h = jnp.tanh(h.astype(jnp.bfloat16))
    else:
        h = jnp.tanh(h).astype(x.dtype)

    # out_proj: h @ W2 — f32 accumulation.
    y = jnp.dot(h, w2_ref[...], preferred_element_type=jnp.float32)
    y = y + b2_ref[...].astype(jnp.float32)

    o_ref[...] = y.astype(o_ref.dtype)


def classification_head(features, w1, b1, w2, b2, *, tile_n=1024):
    """features: (B, S, H) or (N, H).
    w1: (H, H) torch (out, in) layout, b1: (H,),
    w2: (L, H) torch (out, in) layout, b2: (L,).
    Returns (..., L) in features.dtype (eval-mode forward)."""
    orig_shape = features.shape
    hidden = orig_shape[-1]
    num_labels = w2.shape[0]

    lanes = 128
    l_pad = _round_up(num_labels, lanes)

    x2d = features.reshape(-1, hidden)          # (N, H) — no row padding
    n_rows = x2d.shape[0]

    # Dtype-aware sublane multiple for the row tile (f32: 8, bf16: 16, i8: 32).
    itemsize = jnp.dtype(features.dtype).itemsize
    sublane = {4: 8, 2: 16, 1: 32}.get(itemsize, 8)

    # Row tile: big by default (amortize per-step overhead), dtype-rounded.
    tn = max(sublane, _round_up(min(int(tile_n), n_rows), sublane))
    # Ensure >=2 grid steps when possible so "parallel" can shard across the
    # two v7x TensorCores even for small N.
    if pl.cdiv(n_rows, tn) < 2:
        half = _round_up(pl.cdiv(n_rows, 2), sublane)
        if half < n_rows:
            tn = half
    grid = (pl.cdiv(n_rows, tn),)

    # One-time weight prep (hoisted/constant-folded under jit): transpose to
    # (in, out) so the kernel's dots contract RHS dim 0 directly on the MXU,
    # and lane-pad the out_proj to Lp.
    w1_t = jnp.transpose(w1)                                       # (H, H)
    w2_t = jnp.transpose(jnp.pad(w2, ((0, l_pad - num_labels), (0, 0))))  # (H, Lp)
    b1_2d = b1.reshape(1, hidden)
    b2_2d = jnp.pad(b2, (0, l_pad - num_labels)).reshape(1, l_pad)

    cost = pl.CostEstimate(
        flops=2 * n_rows * hidden * (hidden + l_pad),
        transcendentals=n_rows * hidden,
        bytes_accessed=(x2d.size * itemsize
                        + w1_t.size * jnp.dtype(w1.dtype).itemsize
                        + w2_t.size * jnp.dtype(w2.dtype).itemsize
                        + n_rows * l_pad * itemsize),
    )

    def _call(single_buffer_weights):
        if single_buffer_weights:
            # Grid-invariant operands: constant index_map -> never re-DMA'd;
            # single-buffer them to halve their VMEM footprint.
            def w_spec(shape):
                return pl.BlockSpec(shape, lambda i: (0, 0),
                                    pipeline_mode=pl.Buffered(1))
        else:
            def w_spec(shape):
                return pl.BlockSpec(shape, lambda i: (0, 0))

        return pl.pallas_call(
            classification_head_kernel,
            out_shape=jax.ShapeDtypeStruct((n_rows, l_pad), features.dtype),
            grid_spec=pltpu.PrefetchScalarGridSpec(
                num_scalar_prefetch=0,
                grid=grid,
                in_specs=[
                    pl.BlockSpec((tn, hidden), lambda i: (i, 0)),   # x tile
                    w_spec((hidden, hidden)),                       # W1 resident
                    w_spec((1, hidden)),                            # b1 resident
                    w_spec((hidden, l_pad)),                        # W2 resident
                    w_spec((1, l_pad)),                             # b2 resident
                ],
                out_specs=pl.BlockSpec((tn, l_pad), lambda i: (i, 0)),
            ),
            compiler_params=pltpu.CompilerParams(
                dimension_semantics=("parallel",),
                # Above v5e (16 MiB) / v6e (32 MiB) default scoped limits,
                # below v7x's 64 MiB physical per-TC VMEM.
                vmem_limit_bytes=48 * 1024 * 1024),
            cost_estimate=cost,
        )(x2d, w1_t, b1_2d, w2_t, b2_2d)

    try:
        out = _call(True)
    except Exception:
        # Older JAX without Buffered(1) support: fall back to default buffering.
        out = _call(False)

    out = out[:, :num_labels]
    return out.reshape(*orig_shape[:-1], num_labels)


def _reference(features, w1, b1, w2, b2):
    h = jnp.tanh(features @ w1.T + b1)
    return h @ w2.T + b2


if __name__ == "__main__":
    # Small config: batch=2, seq=8, hidden=32, num_labels=4
    batch, seq, hidden, num_labels = 2, 8, 32, 4

    key = jax.random.PRNGKey(0)
    k_x, k_w1, k_b1, k_w2, k_b2 = jax.random.split(key, 5)

    features = jax.random.normal(k_x, (batch, seq, hidden), dtype=jnp.float32)

    # Deterministic parameter init (torch Linear layout: weight is (out, in)).
    w1 = jax.random.normal(k_w1, (hidden, hidden), dtype=jnp.float32) * 0.05
    b1 = jax.random.normal(k_b1, (hidden,), dtype=jnp.float32) * 0.01
    w2 = jax.random.normal(k_w2, (num_labels, hidden), dtype=jnp.float32) * 0.05
    b2 = jax.random.normal(k_b2, (num_labels,), dtype=jnp.float32) * 0.01

    ref = _reference(features, w1, b1, w2, b2)

    # f32 path (exercises the >=2-step grid split).
    out = classification_head(features, w1, b1, w2, b2)
    out = jax.block_until_ready(out)
    assert out.shape == (batch, seq, num_labels), out.shape
    assert jnp.allclose(out, ref, atol=5e-3, rtol=5e-3), "f32 mismatch vs reference"

    # bf16-operand path (bf16 MXU operands + bf16 tanh; f32 accumulation).
    out_bf16 = classification_head(
        features.astype(jnp.bfloat16),
        w1.astype(jnp.bfloat16), b1.astype(jnp.bfloat16),
        w2.astype(jnp.bfloat16), b2.astype(jnp.bfloat16))
    out_bf16 = jax.block_until_ready(out_bf16)
    assert out_bf16.shape == (batch, seq, num_labels), out_bf16.shape
    assert jnp.allclose(out_bf16.astype(jnp.float32), ref, atol=3e-2, rtol=3e-2), \
        "bf16 mismatch vs reference"

    print("KERNEL_OK")
</pallas_src>

<mosaic_0001>
module attributes {stable_mosaic.version = 11 : i64} {
  func.func @classification_head_kernel(%arg0: i32, %arg1: memref<8x32xf32, #tpu.memory_space<vmem>>, %arg2: memref<32x32xf32, #tpu.memory_space<vmem>>, %arg3: memref<1x32xf32, #tpu.memory_space<vmem>>, %arg4: memref<32x128xf32, #tpu.memory_space<vmem>>, %arg5: memref<1x128xf32, #tpu.memory_space<vmem>>, %arg6: memref<8x128xf32, #tpu.memory_space<vmem>>) attributes {dimension_semantics = [#tpu.dimension_semantics<parallel>], iteration_bounds = array<i64: 2>, scalar_prefetch = 0 : i64, scratch_operands = 0 : i64, tpu.core_type = #tpu.core_type<tc>, window_params = [{transform_indices = @transform_0, window_bounds = array<i64: 8, 32>}, {pipeline_mode = #tpu.pipeline_mode<synchronous>, transform_indices = @transform_1, window_bounds = array<i64: 32, 32>}, {pipeline_mode = #tpu.pipeline_mode<synchronous>, transform_indices = @transform_2, window_bounds = array<i64: 1, 32>}, {pipeline_mode = #tpu.pipeline_mode<synchronous>, transform_indices = @transform_3, window_bounds = array<i64: 32, 128>}, {pipeline_mode = #tpu.pipeline_mode<synchronous>, transform_indices = @transform_4, window_bounds = array<i64: 1, 128>}, {transform_indices = @transform_5, window_bounds = array<i64: 8, 128>}]} {
    %c0 = arith.constant 0 : index
    %c0_0 = arith.constant 0 : index
    %0 = vector.load %arg1[%c0, %c0_0] : memref<8x32xf32, #tpu.memory_space<vmem>>, vector<8x32xf32>
    %c0_1 = arith.constant 0 : index
    %c0_2 = arith.constant 0 : index
    %1 = vector.load %arg2[%c0_1, %c0_2] : memref<32x32xf32, #tpu.memory_space<vmem>>, vector<32x32xf32>
    %cst = arith.constant dense<0.000000e+00> : vector<8x32xf32>
    %2 = tpu.matmul %0, %1, %cst {dimension_numbers = #tpu.dot_dimension_numbers<[1], [0], [0], [1], [0, 0, 1, 1], [], []>} : vector<8x32xf32>, vector<32x32xf32>, vector<8x32xf32> -> vector<8x32xf32>
    %c0_3 = arith.constant 0 : index
    %c0_4 = arith.constant 0 : index
    %3 = vector.load %arg3[%c0_3, %c0_4] : memref<1x32xf32, #tpu.memory_space<vmem>>, vector<1x32xf32>
    %4 = vector.broadcast %3 : vector<1x32xf32> to vector<8x32xf32>
    %5 = arith.addf %2, %4 : vector<8x32xf32>
    %6 = math.tanh %5 : vector<8x32xf32>
    %c0_5 = arith.constant 0 : index
    %c0_6 = arith.constant 0 : index
    %7 = vector.load %arg4[%c0_5, %c0_6] : memref<32x128xf32, #tpu.memory_space<vmem>>, vector<32x128xf32>
    %cst_7 = arith.constant dense<0.000000e+00> : vector<8x128xf32>
    %8 = tpu.matmul %6, %7, %cst_7 {dimension_numbers = #tpu.dot_dimension_numbers<[1], [0], [0], [1], [0, 0, 1, 1], [], []>} : vector<8x32xf32>, vector<32x128xf32>, vector<8x128xf32> -> vector<8x128xf32>
    %c0_8 = arith.constant 0 : index
    %c0_9 = arith.constant 0 : index
    %9 = vector.load %arg5[%c0_8, %c0_9] : memref<1x128xf32, #tpu.memory_space<vmem>>, vector<1x128xf32>
    %10 = vector.broadcast %9 : vector<1x128xf32> to vector<8x128xf32>
    %11 = arith.addf %8, %10 : vector<8x128xf32>
    %c0_10 = arith.constant 0 : index
    %c0_11 = arith.constant 0 : index
    %12 = vector.load %arg6[%c0_10, %c0_11] : memref<8x128xf32, #tpu.memory_space<vmem>>, vector<8x128xf32>
    tpu.vector_store %arg6[%c0_10, %c0_11], %11 {strides = array<i32>} : memref<8x128xf32, #tpu.memory_space<vmem>>, vector<8x128xf32>,
    return
  }
  func.func @transform_0(%arg0: i32) -> (i32, i32) {
    %c0_i32 = arith.constant 0 : i32
    %c0_i32_0 = arith.constant 0 : i32
    return %arg0, %c0_i32 : i32, i32
  }
  func.func @transform_1(%arg0: i32) -> (i32, i32) {
    %c0_i32 = arith.constant 0 : i32
    %c0_i32_0 = arith.constant 0 : i32
    %c0_i32_1 = arith.constant 0 : i32
    return %c0_i32, %c0_i32_0 : i32, i32
  }
  func.func @transform_2(%arg0: i32) -> (i32, i32) {
    %c0_i32 = arith.constant 0 : i32
    %c0_i32_0 = arith.constant 0 : i32
    %c0_i32_1 = arith.constant 0 : i32
    return %c0_i32, %c0_i32_0 : i32, i32
  }
  func.func @transform_3(%arg0: i32) -> (i32, i32) {
    %c0_i32 = arith.constant 0 : i32
    %c0_i32_0 = arith.constant 0 : i32
    %c0_i32_1 = arith.constant 0 : i32
    return %c0_i32, %c0_i32_0 : i32, i32
  }
  func.func @transform_4(%arg0: i32) -> (i32, i32) {
    %c0_i32 = arith.constant 0 : i32
    %c0_i32_0 = arith.constant 0 : i32
    %c0_i32_1 = arith.constant 0 : i32
    return %c0_i32, %c0_i32_0 : i32, i32
  }
  func.func @transform_5(%arg0: i32) -> (i32, i32) {
    %c0_i32 = arith.constant 0 : i32
    %c0_i32_0 = arith.constant 0 : i32
    return %arg0, %c0_i32 : i32, i32
  }
}

module attributes {stable_mosaic.version = 11 : i64} {
  func.func @classification_head_kernel(%arg0: i32, %arg1: memref<8x32xf32, #tpu.memory_space<vmem>>, %arg2: memref<32x32xf32, #tpu.memory_space<vmem>>, %arg3: memref<1x32xf32, #tpu.memory_space<vmem>>, %arg4: memref<32x128xf32, #tpu.memory_space<vmem>>, %arg5: memref<1x128xf32, #tpu.memory_space<vmem>>, %arg6: memref<8x128xf32, #tpu.memory_space<vmem>>) attributes {dimension_semantics = [#tpu.dimension_semantics<parallel>], iteration_bounds = array<i64: 2>, scalar_prefetch = 0 : i64, scratch_operands = 0 : i64, tpu.core_type = #tpu.core_type<tc>, window_params = [{transform_indices = @transform_0, window_bounds = array<i64: 8, 32>}, {pipeline_mode = #tpu.pipeline_mode<synchronous>, transform_indices = @transform_1, window_bounds = array<i64: 32, 32>}, {pipeline_mode = #tpu.pipeline_mode<synchronous>, transform_indices = @transform_2, window_bounds = array<i64: 1, 32>}, {pipeline_mode = #tpu.pipeline_mode<synchronous>, transform_indices = @transform_3, window_bounds = array<i64: 32, 128>}, {pipeline_mode = #tpu.pipeline_mode<synchronous>, transform_indices = @transform_4, window_bounds = array<i64: 1, 128>}, {transform_indices = @transform_5, window_bounds = array<i64: 8, 128>}]} {
    %c0 = arith.constant 0 : index
    %c0_0 = arith.constant 0 : index
    %0 = vector.load %arg1[%c0, %c0_0] : memref<8x32xf32, #tpu.memory_space<vmem>>, vector<8x32xf32>
    %c0_1 = arith.constant 0 : index
    %c0_2 = arith.constant 0 : index
    %1 = vector.load %arg2[%c0_1, %c0_2] : memref<32x32xf32, #tpu.memory_space<vmem>>, vector<32x32xf32>
    %cst = arith.constant dense<0.000000e+00> : vector<8x32xf32>
    %2 = tpu.matmul %0, %1, %cst {dimension_numbers = #tpu.dot_dimension_numbers<[1], [0], [0], [1], [0, 0, 1, 1], [], []>} : vector<8x32xf32>, vector<32x32xf32>, vector<8x32xf32> -> vector<8x32xf32>
    %c0_3 = arith.constant 0 : index
    %c0_4 = arith.constant 0 : index
    %3 = vector.load %arg3[%c0_3, %c0_4] : memref<1x32xf32, #tpu.memory_space<vmem>>, vector<1x32xf32>
    %4 = vector.broadcast %3 : vector<1x32xf32> to vector<8x32xf32>
    %5 = arith.addf %2, %4 : vector<8x32xf32>
    %6 = math.tanh %5 : vector<8x32xf32>
    %c0_5 = arith.constant 0 : index
    %c0_6 = arith.constant 0 : index
    %7 = vector.load %arg4[%c0_5, %c0_6] : memref<32x128xf32, #tpu.memory_space<vmem>>, vector<32x128xf32>
    %cst_7 = arith.constant dense<0.000000e+00> : vector<8x128xf32>
    %8 = tpu.matmul %6, %7, %cst_7 {dimension_numbers = #tpu.dot_dimension_numbers<[1], [0], [0], [1], [0, 0, 1, 1], [], []>} : vector<8x32xf32>, vector<32x128xf32>, vector<8x128xf32> -> vector<8x128xf32>
    %c0_8 = arith.constant 0 : index
    %c0_9 = arith.constant 0 : index
    %9 = vector.load %arg5[%c0_8, %c0_9] : memref<1x128xf32, #tpu.memory_space<vmem>>, vector<1x128xf32>
    %10 = vector.broadcast %9 : vector<1x128xf32> to vector<8x128xf32>
    %11 = arith.addf %8, %10 : vector<8x128xf32>
    %c0_10 = arith.constant 0 : index
    %c0_11 = arith.constant 0 : index
    %12 = vector.load %arg6[%c0_10, %c0_11] : memref<8x128xf32, #tpu.memory_space<vmem>>, vector<8x128xf32>
    tpu.vector_store %arg6[%c0_10, %c0_11], %11 {strides = array<i32>} : memref<8x128xf32, #tpu.memory_space<vmem>>, vector<8x128xf32>,
    return
  }
  func.func @transform_0(%arg0: i32) -> (i32, i32) {
    %c0_i32 = arith.constant 0 : i32
    %c0_i32_0 = arith.constant 0 : i32
    return %arg0, %c0_i32 : i32, i32
  }
  func.func @transform_1(%arg0: i32) -> (i32, i32) {
    %c0_i32 = arith.constant 0 : i32
    %c0_i32_0 = arith.constant 0 : i32
    %c0_i32_1 = arith.constant 0 : i32
    return %c0_i32, %c0_i32_0 : i32, i32
  }
  func.func @transform_2(%arg0: i32) -> (i32, i32) {
    %c0_i32 = arith.constant 0 : i32
    %c0_i32_0 = arith.constant 0 : i32
    %c0_i32_1 = arith.constant 0 : i32
    return %c0_i32, %c0_i32_0 : i32, i32
  }
  func.func @transform_3(%arg0: i32) -> (i32, i32) {
    %c0_i32 = arith.constant 0 : i32
    %c0_i32_0 = arith.constant 0 : i32
    %c0_i32_1 = arith.constant 0 : i32
    return %c0_i32, %c0_i32_0 : i32, i32
  }
  func.func @transform_4(%arg0: i32) -> (i32, i32) {
    %c0_i32 = arith.constant 0 : i32
    %c0_i32_0 = arith.constant 0 : i32
    %c0_i32_1 = arith.constant 0 : i32
    return %c0_i32, %c0_i32_0 : i32, i32
  }
  func.func @transform_5(%arg0: i32) -> (i32, i32) {
    %c0_i32 = arith.constant 0 : i32
    %c0_i32_0 = arith.constant 0 : i32
    return %arg0, %c0_i32 : i32, i32
  }
}

</mosaic_0001>

<bundles_post_ra>
// kernel: tpu_custom_call.1
= control target key start
LH: loop header
LB: loop body
LE: loop exit
PB: predicated region body
PF: predicated region fallthrough
CT: control target
= control target key end

     0   :  { %10 = vsyncpa [#allocation3], 0  ;;  %s1120_s0 = inlined_call_operand.hbm [shape: f32[16,32], index: 0, kind: input, shape index: {}]   ;;  %s1121_s1 = inlined_call_operand.hbm [shape: f32[32,32], index: 1, kind: input, shape index: {}]   ;;  %s1122_s2 = inlined_call_operand.vmem [shape: f32[1,32], index: 2, kind: input, shape index: {}]   ;;  %s1123_s3 = inlined_call_operand.hbm [shape: f32[32,128], index: 3, kind: input, shape index: {}]   ;;  %s1124_s4 = inlined_call_operand.vmem [shape: f32[1,128], index: 4, kind: input, shape index: {}]   ;;  %s1125_s5 = inlined_call_operand.hbm [shape: f32[16,128], index: 5, kind: output, shape index: {}]  }
   0x1   :  { %12 = vsyncpa [#allocation3 + $0x1], 0 }
   0x2   :  { %13 = vsyncpa [#allocation6], 0 }
   0x3   :  { %14 = vsyncpa [#allocation4], 0 }
   0x4   :  { %16 = vsyncpa [#allocation4 + $0x1], 0  ;;  %s879_s18 = smov 0   ;;  %s881_s19 = smov 0  }
   0x5   :  { %s883_s20 = smov 0   ;;  %s885_s21 = smov 0  }
   0x6 LB: > { %s900_s22 = sadd.s32 4294967295, %s838_s21   ;;  %s544_s23 = sadd.s32 4294967294, %s838_s21   ;;  %s838_s21 = sphi %s885_s21, %s1145_s21   ;;  %s834_s20 = sphi %s883_s20, %s1144_s20   ;;  %s830_s19 = sphi %s881_s19, %s1143_s19   ;;  %s826_s18 = sphi %s879_s18, %s1142_s18  }
   0x7   : > { %p42_p0 = scmp.ne.s32.totalorder %s830_s19, %s826_s18  ;;  %p1126_p1 = scmp.eq.s32.totalorder %s900_s22, 0 }
   0x8   : > { %p156_p3 = scmp.eq.s32.totalorder %s544_s23, 1  ;;  %p545_p5 = scmp.ge.s32.totalorder %s838_s21, 1 }
   0x9   : > { %p909_p4 = por %p1126_p1, %p42_p0  ;;  %p163_p7 = scmp.lt.s32.totalorder %s838_s21, 3 }
   0xa   : > { %p914_p6 = por %p156_p3, %p42_p0  ;;  %s840_s27 = smov [#allocation5]  }
   0xb   : > { %s1129_s24 = scalar_select %p909_p4, 1, 0 }
   0xc   : > { %s1130_s25 = scalar_select %p914_p6, 1, 0 }
   0xd   : > { %p919_p8 = pnand %p545_p5, %p163_p7  ;;  %s175_s28 = sshll.u32 %s840_s27, 4  ;;  %s923_s28 = int_to_ptr.vmem [resolvable:$true] %s175_s28 }
   0xe   : > { %s841_s30 = smov [#allocation7]   ;;  %s682_s9 = scalar_lea.hbm %s1121_s1, 512 }
   0xf   : > { %p620_p9 = pneg %p919_p8  ;;  %s191_s6 = sshll.u32 %s841_s30, 4  ;;  %s934_s6 = int_to_ptr.vmem [resolvable:$true] %s191_s6 }
  0x10   : > { %p683_p12 = scmp.ne.s32.totalorder %s1121_s1, %s682_s9  ;;  %p689_p5 = scmp.lt.u32.totalorder %s682_s9, %s1121_s1 }
  0x11   : > { %p930_p11 = pnand %p620_p9, %p1126_p1 }
  0x13   : > { %p684_p13 = pneg %p930_p11 }
  0x15   : > { %p685_p0 = pnand %p684_p13, %p683_p12 }
  0x17   : > { %p686_p3 = pneg %p685_p0 }
  0x19   : > { %p691_p7 = pnand %p689_p5, %p686_p3 }
  0x1b   : > { %694 = shalt.err (!%p691_p7)
}
  0x1c   : > { %s695_s14 = scalar_lea.vmem %s923_s28, 512  ;;  %p703_p2 = scmp.lt.s32.totalorder %s923_s28, %s923_s28 }
  0x1d   : > { %p696_p9 = scmp.ne.s32.totalorder %s923_s28, %s695_s14  ;;  %p704_p12 = scmp.lt.s32.totalorder %s695_s14, %s695_s14 }
  0x1f   : > { %p698_p10 = pnand %p696_p9, %p684_p13  ;;  %p705_p0 = por %p704_p12, %p703_p2 }
  0x21   : > { %p699_p1 = pneg %p698_p10 }
  0x23   : > { %p706_p6 = pnand %p705_p0, %p699_p1 }
  0x25   : > { %709 = shalt.err (!%p706_p6)
}
  0x26   : > { %s842_s15 = smov 128   ;;  %s843_s16 = smov 8  }
  0x27   : > { %623 = dma.hbm_to_vmem [thread:$0]  (!%p930_p11), %s1121_s1, 512, %s923_s28, [#allocation6], %s842_s15, %s842_s15, %s843_s16  }
  0x28   : > { %s710_s7 = scalar_lea.hbm %s1123_s3, 512 }
  0x29   : > { %p711_p2 = scmp.ne.s32.totalorder %s1123_s3, %s710_s7  ;;  %p717_p10 = scmp.lt.u32.totalorder %s710_s7, %s1123_s3 }
  0x2b   : > { %p713_p1 = pnand %p711_p2, %p684_p13 }
  0x2d   : > { %p714_p6 = pneg %p713_p1 }
  0x2f   : > { %p719_p3 = pnand %p717_p10, %p714_p6 }
  0x31   : > { %722 = shalt.err (!%p719_p3)
}
  0x32   : > { %s723_s28 = scalar_lea.vmem %s934_s6, 512  ;;  %p731_p12 = scmp.lt.s32.totalorder %s934_s6, %s934_s6 }
  0x33   : > { %p724_p5 = scmp.ne.s32.totalorder %s934_s6, %s723_s28  ;;  %p732_p0 = scmp.lt.s32.totalorder %s723_s28, %s723_s28 }
  0x35   : > { %p726_p7 = pnand %p724_p5, %p684_p13  ;;  %p733_p2 = por %p732_p0, %p731_p12 }
  0x37   : > { %p727_p9 = pneg %p726_p7 }
  0x39   : > { %p734_p1 = pnand %p733_p2, %p727_p9 }
  0x3b   : > { %737 = shalt.err (!%p734_p1)
}
  0x3c   : > { %626 = dma.hbm_to_vmem [thread:$0]  (!%p930_p11), %s1123_s3, 512, %s934_s6, [#allocation6], %s842_s15, %s842_s15, %s843_s16  }
  0x3d   : > { %s989_s14 = sadd.s32 1, %s838_s21   ;;  %s29_s29 = sadd.s32 1, %s834_s20 }
  0x3e   : > { %s26_s17 = ssub.s32 %s838_s21, %s989_s14  ;;  %p36_p13 = scmp.ne.s32.totalorder %s834_s20, %s830_s19 }
  0x3f   : > { %p27_p6 = scmp.eq.s32.totalorder %s26_s17, 0  ;;  %p37_p10 = scmp.eq.s32.totalorder %s838_s21, 0 }
  0x40   : > { %p1133_p3 = scmp.eq.s32.totalorder %s900_s22, 1  ;;  %p637_p7 = scmp.lt.s32.totalorder %s838_s21, 2 }
  0x41   : > { %s1005_s27 = scalar_select %p27_p6, %s834_s20, %s29_s29  }
  0x42   : > { %p999_p5 = por %p1133_p3, %p36_p13  ;;  %p38_p9 = por %p37_p10, %p36_p13 }
  0x43   : > { %s208_s30 = sand.u32 1, %s834_s20   ;;  %s550_s6 = sshll.u32 %s838_s21, 7 }
  0x44   : > { %s1134_s23 = scalar_select %p999_p5, 1, 0 }
  0x45   : > { %s549_s7 = sshll.u32 %s208_s30, 3  ;;  %s1012_s8 = scalar_lea.hbm %s1120_s0, %s550_s6 }
  0x46   : > { %s212_s9 = scalar_lea.vmem [#allocation2], %s549_s7  ;;  %p1016_p11 = pnand %p637_p7, %p38_p9 }
  0x47   : > { %s219_s10 = sshll.u32 %s212_s9, 4  ;;  %s209_s28 = scalar_lea.sflag [#allocation3], %s208_s30  ;;  %s1014_s10 = int_to_ptr.vmem [resolvable:$true] %s219_s10 }
  0x48   : > { %s738_s12 = scalar_lea.hbm %s1012_s8, 128  ;;  %p740_p0 = pneg %p1016_p11 }
  0x49   : > { %p739_p12 = scmp.ne.s32.totalorder %s1012_s8, %s738_s12  ;;  %s743_s17 = scalar_lea.hbm %s1120_s0, 256 }
  0x4a   : > { %p744_p13 = scmp.lt.u32.totalorder %s1012_s8, %s1120_s0  ;;  %p745_p6 = scmp.lt.u32.totalorder %s743_s17, %s738_s12 }
  0x4b   : > { %p741_p2 = pnand %p740_p0, %p739_p12  ;;  %p747_p3 = scmp.lt.u32.totalorder %s738_s12, %s1012_s8 }
  0x4c   : > { %p746_p10 = por %p745_p6, %p744_p13 }
  0x4d   : > { %p742_p1 = pneg %p741_p2 }
  0x4e   : > { %p748_p7 = por %p747_p3, %p746_p10 }
  0x50   : > { %p749_p9 = pnand %p748_p7, %p742_p1 }
  0x52   : > { %752 = shalt.err (!%p749_p9)
}
  0x53   : > { %s753_s30 = scalar_lea.vmem %s1014_s10, 128  ;;  %s844_s15 = smov [#allocation2]  }
  0x54   : > { %p754_p12 = scmp.ne.s32.totalorder %s1014_s10, %s753_s30  ;;  %s758_s16 = sshll.u32 %s844_s15, 4  ;;  %s759_s16 = int_to_ptr.vmem [resolvable:$false] %s758_s16 }
  0x55   : > { %s760_s9 = scalar_lea.vmem %s759_s16, 256  ;;  %p761_p4 = scmp.lt.s32.totalorder %s1014_s10, %s759_s16 }
  0x56   : > { %p756_p2 = pnand %p754_p12, %p740_p0  ;;  %p762_p13 = scmp.lt.s32.totalorder %s760_s9, %s753_s30 }
  0x58   : > { %p757_p5 = pneg %p756_p2  ;;  %p763_p6 = por %p762_p13, %p761_p4 }
  0x5a   : > { %p764_p10 = pnand %p763_p6, %p757_p5 }
  0x5c   : > { %767 = shalt.err (!%p764_p10)
}
  0x5d   : > { %630 = dma.hbm_to_vmem [thread:$0]  (!%p1016_p11), %s1012_s8, 128, %s1014_s10, %s209_s28  }
  0x5e   : > { %228 = sbr.rel (%p919_p8) target bundleno = 568 (0x238), region = 40  ;;  %s1048_s12 = sand.u32 (!%p919_p8), 1, %s830_s19  }
  0x5f   : > { %s552_s13 = sshll.u32 (!%p919_p8), %s1048_s12, 3  ;;  %s231_s29 = scalar_lea.sflag (!%p919_p8), [#allocation3], %s1048_s12 }
  0x60   : > { %s234_s17 = scalar_lea.vmem (!%p919_p8), [#allocation2], %s552_s13  ;;  %p1136_p4 = scmp.ne.s32.totalorder (!%p919_p8), %s1129_s24, 0 }
  0x65   : > { %813 = dma.done.wait (%p1136_p4), %s231_s29, 128  }
  0x66   : > { %815 = vsyncadd (%p1136_p4), %s231_s29, 4294967168  ;;  %p1137_p5 = scmp.eq.s32.totalorder %s900_s22, 0 }
  0x68   : > { %817 = dma.done.wait (%p1137_p5), [#allocation6], 1024   ;;  %p1138_p8 = pmov %p1137_p5 }
  0x69   : > { %v845_v0 = vmov 0.0|0.0   ;;  %vm846_vm0 = vmmov 0   ;;  %v847_v1 = vmov 0.0   ;;  %v270_v2 = vld [vmem:[#allocation5] sm:$0xff]  ;;  %v271_v3 = vld [vmem:[#allocation5 + $0x8] sm:$0xff]  ;;  %v272_v4 = vld [vmem:[#allocation5 + $0x10] sm:$0xff] }
  0x6a   : > { %819 = vsyncadd (%p1138_p8), [#allocation6], 4294966272  ;;  %596 = vmatprep.subr.bf16.mxu0 %v845_v0  ;;  %582 = vmatprep.mubr.msk.f32.mxu0 %vm846_vm0, %v847_v1  ;;  %v597_v5 = vpack.c.bf16 %v271_v3, %v270_v2  ;;  %v273_v6 = vld [vmem:[#allocation5 + $0x18] sm:$0xff]  ;;  %vm281_vm1 = vcmask 261120   ;;  %v356_v9 = vld [vmem:[#allocation7] sm:$0xff]  ;;  %s561_s11 = sshll.u32 %s900_s22, 7 }
  0x6b   : > { %602 = vmatprep.subr.bf16.mxu1 %v845_v0  ;;  %593 = vmatprep.mubr.msk.f32.mxu1 %vm846_vm0, %v847_v1  ;;  %v600_v7 = vpack.c.bf16 %v273_v6, %v272_v4  ;;  %v269_v8 = vld [vmem:[%s234_s17] sm:$0xff]  ;;  %v357_v10 = vld [vmem:[#allocation7 + $0x8] sm:$0xff]  ;;  %s268_s28 = scalar_lea.vmem [#allocation8], %s552_s13  ;;  %s1076_s15 = scalar_lea.hbm %s1125_s5, %s561_s11 }
  0x6c   : > { %598 = vmatpush3.bf16.msra.mxu0 %v597_v5  ;;  %v358_v11 = vld [vmem:[#allocation7 + $0x10] sm:$0xff]  ;;  %v603_v12 = vpack.c.bf16 %v357_v10, %v356_v9  ;;  %v359_v13 = vld [vmem:[#allocation7 + $0x18] sm:$0xff]  ;;  %s455_s7 = sshll.u32 %s268_s28, 4  ;;  %s442_s16 = scalar_lea.sflag [#allocation4], %s1048_s12  ;;  %s1078_s7 = int_to_ptr.vmem [resolvable:$true] %s455_s7 }
  0x6d   : > { %599 = vmatprep.subr.bf16.mxu0 %v845_v0  ;;  %v606_v14 = vpack.c.bf16 %v359_v13, %v358_v11  ;;  %v556_v15 = vld [vmem:[%s1122_s2] ss:$0 sm:$0xff]  ;;  %s768_s9 = scalar_lea.vmem %s1078_s7, 128  ;;  %p1139_p0 = scmp.ne.s32.totalorder %s1134_s23, 0 }
  0x6e   : > { %604 = vmatpush3.bf16.msra.mxu1 %v603_v12  ;;  %v558_v20 = vld [vmem:[%s1124_s4] ss:$0 sm:$0xff]  ;;  %p769_p11 = scmp.ne.s32.totalorder %s1078_s7, %s768_s9  ;;  %s848_s22 = smov [#allocation8]  }
  0x6f   : > { %605 = vmatprep.subr.bf16.mxu1 %v845_v0  ;;  %s772_s13 = sshll.u32 %s848_s22, 4  ;;  %s773_s13 = int_to_ptr.vmem [resolvable:$false] %s772_s13 }
  0x70   : > { %601 = vmatpush3.bf16.msra.mxu0 %v600_v7  ;;  %p770_p1 = pnand %p769_p11, %p1139_p0  ;;  %s774_s29 = scalar_lea.vmem %s773_s13, 256 }
  0x71   : > { %p775_p7 = scmp.lt.s32.totalorder %s1078_s7, %s773_s13  ;;  %p776_p9 = scmp.lt.s32.totalorder %s774_s29, %s768_s9 }
  0x72   : > { %607 = vmatpush3.bf16.msra.mxu1 %v606_v14  ;;  %p771_p3 = pneg %p770_p1 }
  0x73   : > { %583 = vmatmul.mubr.msk.f32.vlgmr.msra.gmra.mrb[0].mxu0 %vm281_vm1, %v269_v8  ;;  %p777_p12 = por %p776_p9, %p775_p7 }
  0x75   : > { %p778_p2 = pnand %p777_p12, %p771_p3 }
 0x146   : > { %v351_v16 = vpop.f32.mrb[0].mxu0 }
 0x147   : > { %v352_v17 = vadd.f32 %v556_v15, %v351_v16  ;;  %v584_v18 = vpop.f32.mrb[1].mxu0 }
 0x149   : > { %680 = vtanh.f32 %v352_v17 }
 0x153   : > { %v681_v19 = vpop.eup %680 }
 0x154   : > { %594 = vmatmul.mubr.msk.f32.vlgmr.msra.gmra.mrb[0].mxu1 %vm281_vm1, %v681_v19 }
 0x227   : > { %v436_v21 = vpop.f32.mrb[0].mxu1 }
 0x228   : > { %v437_v22 = vadd.f32 %v558_v20, %v436_v21  ;;  %v595_v23 = vpop.f32.mrb[1].mxu1 }
 0x22a   : > { %440 = vst [vmem:[%s268_s28] sm:$0xff] %v437_v22 }
 0x22b   : > { %781 = shalt.err (!%p778_p2)
}
 0x22c   : > { %s782_s12 = scalar_lea.hbm %s1076_s15, 128  ;;  %s786_s26 = scalar_lea.hbm %s1125_s5, 256 }
 0x22d   : > { %p783_p13 = scmp.ne.s32.totalorder %s1076_s15, %s782_s12  ;;  %p787_p4 = scmp.lt.u32.totalorder %s1076_s15, %s1125_s5 }
 0x22e   : > { %p788_p5 = scmp.lt.u32.totalorder %s786_s26, %s782_s12  ;;  %p790_p11 = scmp.lt.u32.totalorder %s782_s12, %s1076_s15 }
 0x22f   : > { %p784_p6 = pnand %p783_p13, %p1139_p0 }
 0x230   : > { %p789_p8 = por %p788_p5, %p787_p4 }
 0x231   : > { %p785_p10 = pneg %p784_p6 }
 0x232   : > { %p791_p1 = por %p790_p11, %p789_p8 }
 0x234   : > { %p792_p3 = pnand %p791_p1, %p785_p10 }
 0x236   : > { %795 = shalt.err (!%p792_p3)
}
 0x237   : > { %618 = dma.vmem_to_hbm [thread:$0]  (%p1139_p0), %s1078_s7, 128, %s1076_s15, %s442_s16  }
 0x238 PF: > { %s467_s11 = sand.u32 1, %s826_s18   ;;  %p1140_p7 = scmp.ne.s32.totalorder %s1130_s25, 0 }
 0x239   : > { %p1141_p9 = scmp.ge.s32.totalorder %s838_s21, 2  ;;  %s468_s28 = scalar_lea.sflag [#allocation4], %s467_s11 }
 0x23b   : > { %p632_p12 = pnand %p1141_p9, %p1140_p7 }
 0x23d   : > { %821 = dma.done.wait (!%p632_p12), %s468_s28, 128  }
 0x23e   : > { %823 = vsyncadd (!%p632_p12), %s468_s28, 4294967168  ;;  %p19_p2 = scmp.ge.s32.totalorder %s989_s14, 4   ;;  %s1142_s18 = smov %s830_s19 }
 0x23f   : > { %s1143_s19 = smov %s834_s20  ;;  %s1144_s20 = smov %s1005_s27 }
 0x240   : > { %s1145_s21 = smov %s989_s14  ;;  %21 = sbr.rel (!%p19_p2) target bundleno = 6 (0x6), region = 93 }
 0x247   :  { %473 = vsyncpa [#allocation3], 1 }
 0x248   :  { %475 = vsyncpa [#allocation3 + $0x1], 1 }
 0x249   :  { %476 = vsyncpa [#allocation6], 1 }
 0x24a   :  { %477 = vsyncpa [#allocation4], 1 }
 0x24b   :  { %479 = vsyncpa [#allocation4 + $0x1], 1 }

// kernel: tpu_custom_call.1
= control target key start
LH: loop header
LB: loop body
LE: loop exit
PB: predicated region body
PF: predicated region fallthrough
CT: control target
= control target key end

     0   :  { %10 = vsyncpa [#allocation3], 0  ;;  %s1120_s0 = inlined_call_operand.hbm [shape: f32[16,32], index: 0, kind: input, shape index: {}]   ;;  %s1121_s1 = inlined_call_operand.hbm [shape: f32[32,32], index: 1, kind: input, shape index: {}]   ;;  %s1122_s2 = inlined_call_operand.vmem [shape: f32[1,32], index: 2, kind: input, shape index: {}]   ;;  %s1123_s3 = inlined_call_operand.hbm [shape: f32[32,128], index: 3, kind: input, shape index: {}]   ;;  %s1124_s4 = inlined_call_operand.vmem [shape: f32[1,128], index: 4, kind: input, shape index: {}]   ;;  %s1125_s5 = inlined_call_operand.hbm [shape: f32[16,128], index: 5, kind: output, shape index: {}]  }
   0x1   :  { %12 = vsyncpa [#allocation3 + $0x1], 0 }
   0x2   :  { %13 = vsyncpa [#allocation6], 0 }
   0x3   :  { %14 = vsyncpa [#allocation4], 0 }
   0x4   :  { %16 = vsyncpa [#allocation4 + $0x1], 0  ;;  %s879_s18 = smov 0   ;;  %s881_s19 = smov 0  }
   0x5   :  { %s883_s20 = smov 0   ;;  %s885_s21 = smov 0  }
   0x6 LB: > { %s900_s22 = sadd.s32 4294967295, %s838_s21   ;;  %s544_s23 = sadd.s32 4294967294, %s838_s21   ;;  %s838_s21 = sphi %s885_s21, %s1145_s21   ;;  %s834_s20 = sphi %s883_s20, %s1144_s20   ;;  %s830_s19 = sphi %s881_s19, %s1143_s19   ;;  %s826_s18 = sphi %s879_s18, %s1142_s18  }
   0x7   : > { %p42_p0 = scmp.ne.s32.totalorder %s830_s19, %s826_s18  ;;  %p1126_p1 = scmp.eq.s32.totalorder %s900_s22, 0 }
   0x8   : > { %p156_p3 = scmp.eq.s32.totalorder %s544_s23, 1  ;;  %p545_p5 = scmp.ge.s32.totalorder %s838_s21, 1 }
   0x9   : > { %p909_p4 = por %p1126_p1, %p42_p0  ;;  %p163_p7 = scmp.lt.s32.totalorder %s838_s21, 3 }
   0xa   : > { %p914_p6 = por %p156_p3, %p42_p0  ;;  %s840_s27 = smov [#allocation5]  }
   0xb   : > { %s1129_s24 = scalar_select %p909_p4, 1, 0 }
   0xc   : > { %s1130_s25 = scalar_select %p914_p6, 1, 0 }
   0xd   : > { %p919_p8 = pnand %p545_p5, %p163_p7  ;;  %s175_s28 = sshll.u32 %s840_s27, 4  ;;  %s923_s28 = int_to_ptr.vmem [resolvable:$true] %s175_s28 }
   0xe   : > { %s841_s30 = smov [#allocation7]   ;;  %s682_s9 = scalar_lea.hbm %s1121_s1, 512 }
   0xf   : > { %p620_p9 = pneg %p919_p8  ;;  %s191_s6 = sshll.u32 %s841_s30, 4  ;;  %s934_s6 = int_to_ptr.vmem [resolvable:$true] %s191_s6 }
  0x10   : > { %p683_p12 = scmp.ne.s32.totalorder %s1121_s1, %s682_s9  ;;  %p689_p5 = scmp.lt.u32.totalorder %s682_s9, %s1121_s1 }
  0x11   : > { %p930_p11 = pnand %p620_p9, %p1126_p1 }
  0x13   : > { %p684_p13 = pneg %p930_p11 }
  0x15   : > { %p685_p0 = pnand %p684_p13, %p683_p12 }
  0x17   : > { %p686_p3 = pneg %p685_p0 }
  0x19   : > { %p691_p7 = pnand %p689_p5, %p686_p3 }
  0x1b   : > { %694 = shalt.err (!%p691_p7)
}
  0x1c   : > { %s695_s14 = scalar_lea.vmem %s923_s28, 512  ;;  %p703_p2 = scmp.lt.s32.totalorder %s923_s28, %s923_s28 }
  0x1d   : > { %p696_p9 = scmp.ne.s32.totalorder %s923_s28, %s695_s14  ;;  %p704_p12 = scmp.lt.s32.totalorder %s695_s14, %s695_s14 }
  0x1f   : > { %p698_p10 = pnand %p696_p9, %p684_p13  ;;  %p705_p0 = por %p704_p12, %p703_p2 }
  0x21   : > { %p699_p1 = pneg %p698_p10 }
  0x23   : > { %p706_p6 = pnand %p705_p0, %p699_p1 }
  0x25   : > { %709 = shalt.err (!%p706_p6)
}
  0x26   : > { %s842_s15 = smov 128   ;;  %s843_s16 = smov 8  }
  0x27   : > { %623 = dma.hbm_to_vmem [thread:$0]  (!%p930_p11), %s1121_s1, 512, %s923_s28, [#allocation6], %s842_s15, %s842_s15, %s843_s16  }
  0x28   : > { %s710_s7 = scalar_lea.hbm %s1123_s3, 512 }
  0x29   : > { %p711_p2 = scmp.ne.s32.totalorder %s1123_s3, %s710_s7  ;;  %p717_p10 = scmp.lt.u32.totalorder %s710_s7, %s1123_s3 }
  0x2b   : > { %p713_p1 = pnand %p711_p2, %p684_p13 }
  0x2d   : > { %p714_p6 = pneg %p713_p1 }
  0x2f   : > { %p719_p3 = pnand %p717_p10, %p714_p6 }
  0x31   : > { %722 = shalt.err (!%p719_p3)
}
  0x32   : > { %s723_s28 = scalar_lea.vmem %s934_s6, 512  ;;  %p731_p12 = scmp.lt.s32.totalorder %s934_s6, %s934_s6 }
  0x33   : > { %p724_p5 = scmp.ne.s32.totalorder %s934_s6, %s723_s28  ;;  %p732_p0 = scmp.lt.s32.totalorder %s723_s28, %s723_s28 }
  0x35   : > { %p726_p7 = pnand %p724_p5, %p684_p13  ;;  %p733_p2 = por %p732_p0, %p731_p12 }
  0x37   : > { %p727_p9 = pneg %p726_p7 }
  0x39   : > { %p734_p1 = pnand %p733_p2, %p727_p9 }
  0x3b   : > { %737 = shalt.err (!%p734_p1)
}
  0x3c   : > { %626 = dma.hbm_to_vmem [thread:$0]  (!%p930_p11), %s1123_s3, 512, %s934_s6, [#allocation6], %s842_s15, %s842_s15, %s843_s16  }
  0x3d   : > { %s989_s14 = sadd.s32 1, %s838_s21   ;;  %s29_s29 = sadd.s32 1, %s834_s20 }
  0x3e   : > { %s26_s17 = ssub.s32 %s838_s21, %s989_s14  ;;  %p36_p13 = scmp.ne.s32.totalorder %s834_s20, %s830_s19 }
  0x3f   : > { %p27_p6 = scmp.eq.s32.totalorder %s26_s17, 0  ;;  %p37_p10 = scmp.eq.s32.totalorder %s838_s21, 0 }
  0x40   : > { %p1133_p3 = scmp.eq.s32.totalorder %s900_s22, 1  ;;  %p637_p7 = scmp.lt.s32.totalorder %s838_s21, 2 }
  0x41   : > { %s1005_s27 = scalar_select %p27_p6, %s834_s20, %s29_s29  }
  0x42   : > { %p999_p5 = por %p1133_p3, %p36_p13  ;;  %p38_p9 = por %p37_p10, %p36_p13 }
  0x43   : > { %s208_s30 = sand.u32 1, %s834_s20   ;;  %s550_s6 = sshll.u32 %s838_s21, 7 }
  0x44   : > { %s1134_s23 = scalar_select %p999_p5, 1, 0 }
  0x45   : > { %s549_s7 = sshll.u32 %s208_s30, 3  ;;  %s1012_s8 = scalar_lea.hbm %s1120_s0, %s550_s6 }
  0x46   : > { %s212_s9 = scalar_lea.vmem [#allocation2], %s549_s7  ;;  %p1016_p11 = pnand %p637_p7, %p38_p9 }
  0x47   : > { %s219_s10 = sshll.u32 %s212_s9, 4  ;;  %s209_s28 = scalar_lea.sflag [#allocation3], %s208_s30  ;;  %s1014_s10 = int_to_ptr.vmem [resolvable:$true] %s219_s10 }
  0x48   : > { %s738_s12 = scalar_lea.hbm %s1012_s8, 128  ;;  %p740_p0 = pneg %p1016_p11 }
  0x49   : > { %p739_p12 = scmp.ne.s32.totalorder %s1012_s8, %s738_s12  ;;  %s743_s17 = scalar_lea.hbm %s1120_s0, 256 }
  0x4a   : > { %p744_p13 = scmp.lt.u32.totalorder %s1012_s8, %s1120_s0  ;;  %p745_p6 = scmp.lt.u32.totalorder %s743_s17, %s738_s12 }
  0x4b   : > { %p741_p2 = pnand %p740_p0, %p739_p12  ;;  %p747_p3 = scmp.lt.u32.totalorder %s738_s12, %s1012_s8 }
  0x4c   : > { %p746_p10 = por %p745_p6, %p744_p13 }
  0x4d   : > { %p742_p1 = pneg %p741_p2 }
  0x4e   : > { %p748_p7 = por %p747_p3, %p746_p10 }
  0x50   : > { %p749_p9 = pnand %p748_p7, %p742_p1 }
  0x52   : > { %752 = shalt.err (!%p749_p9)
}
  0x53   : > { %s753_s30 = scalar_lea.vmem %s1014_s10, 128  ;;  %s844_s15 = smov [#allocation2]  }
  0x54   : > { %p754_p12 = scmp.ne.s32.totalorder %s1014_s10, %s753_s30  ;;  %s758_s16 = sshll.u32 %s844_s15, 4  ;;  %s759_s16 = int_to_ptr.vmem [resolvable:$false] %s758_s16 }
  0x55   : > { %s760_s9 = scalar_lea.vmem %s759_s16, 256  ;;  %p761_p4 = scmp.lt.s32.totalorder %s1014_s10, %s759_s16 }
  0x56   : > { %p756_p2 = pnand %p754_p12, %p740_p0  ;;  %p762_p13 = scmp.lt.s32.totalorder %s760_s9, %s753_s30 }
  0x58   : > { %p757_p5 = pneg %p756_p2  ;;  %p763_p6 = por %p762_p13, %p761_p4 }
  0x5a   : > { %p764_p10 = pnand %p763_p6, %p757_p5 }
  0x5c   : > { %767 = shalt.err (!%p764_p10)
}
  0x5d   : > { %630 = dma.hbm_to_vmem [thread:$0]  (!%p1016_p11), %s1012_s8, 128, %s1014_s10, %s209_s28  }
  0x5e   : > { %228 = sbr.rel (%p919_p8) target bundleno = 568 (0x238), region = 40  ;;  %s1048_s12 = sand.u32 (!%p919_p8), 1, %s830_s19  }
  0x5f   : > { %s552_s13 = sshll.u32 (!%p919_p8), %s1048_s12, 3  ;;  %s231_s29 = scalar_lea.sflag (!%p919_p8), [#allocation3], %s1048_s12 }
  0x60   : > { %s234_s17 = scalar_lea.vmem (!%p919_p8), [#allocation2], %s552_s13  ;;  %p1136_p4 = scmp.ne.s32.totalorder (!%p919_p8), %s1129_s24, 0 }
  0x65   : > { %813 = dma.done.wait (%p1136_p4), %s231_s29, 128  }
  0x66   : > { %815 = vsyncadd (%p1136_p4), %s231_s29, 4294967168  ;;  %p1137_p5 = scmp.eq.s32.totalorder %s900_s22, 0 }
  0x68   : > { %817 = dma.done.wait (%p1137_p5), [#allocation6], 1024   ;;  %p1138_p8 = pmov %p1137_p5 }
  0x69   : > { %v845_v0 = vmov 0.0|0.0   ;;  %vm846_vm0 = vmmov 0   ;;  %v847_v1 = vmov 0.0   ;;  %v270_v2 = vld [vmem:[#allocation5] sm:$0xff]  ;;  %v271_v3 = vld [vmem:[#allocation5 + $0x8] sm:$0xff]  ;;  %v272_v4 = vld [vmem:[#allocation5 + $0x10] sm:$0xff] }
  0x6a   : > { %819 = vsyncadd (%p1138_p8), [#allocation6], 4294966272  ;;  %596 = vmatprep.subr.bf16.mxu0 %v845_v0  ;;  %582 = vmatprep.mubr.msk.f32.mxu0 %vm846_vm0, %v847_v1  ;;  %v597_v5 = vpack.c.bf16 %v271_v3, %v270_v2  ;;  %v273_v6 = vld [vmem:[#allocation5 + $0x18] sm:$0xff]  ;;  %vm281_vm1 = vcmask 261120   ;;  %v356_v9 = vld [vmem:[#allocation7] sm:$0xff]  ;;  %s561_s11 = sshll.u32 %s900_s22, 7 }
  0x6b   : > { %602 = vmatprep.subr.bf16.mxu1 %v845_v0  ;;  %593 = vmatprep.mubr.msk.f32.mxu1 %vm846_vm0, %v847_v1  ;;  %v600_v7 = vpack.c.bf16 %v273_v6, %v272_v4  ;;  %v269_v8 = vld [vmem:[%s234_s17] sm:$0xff]  ;;  %v357_v10 = vld [vmem:[#allocation7 + $0x8] sm:$0xff]  ;;  %s268_s28 = scalar_lea.vmem [#allocation8], %s552_s13  ;;  %s1076_s15 = scalar_lea.hbm %s1125_s5, %s561_s11 }
  0x6c   : > { %598 = vmatpush3.bf16.msra.mxu0 %v597_v5  ;;  %v358_v11 = vld [vmem:[#allocation7 + $0x10] sm:$0xff]  ;;  %v603_v12 = vpack.c.bf16 %v357_v10, %v356_v9  ;;  %v359_v13 = vld [vmem:[#allocation7 + $0x18] sm:$0xff]  ;;  %s455_s7 = sshll.u32 %s268_s28, 4  ;;  %s442_s16 = scalar_lea.sflag [#allocation4], %s1048_s12  ;;  %s1078_s7 = int_to_ptr.vmem [resolvable:$true] %s455_s7 }
  0x6d   : > { %599 = vmatprep.subr.bf16.mxu0 %v845_v0  ;;  %v606_v14 = vpack.c.bf16 %v359_v13, %v358_v11  ;;  %v556_v15 = vld [vmem:[%s1122_s2] ss:$0 sm:$0xff]  ;;  %s768_s9 = scalar_lea.vmem %s1078_s7, 128  ;;  %p1139_p0 = scmp.ne.s32.totalorder %s1134_s23, 0 }
  0x6e   : > { %604 = vmatpush3.bf16.msra.mxu1 %v603_v12  ;;  %v558_v20 = vld [vmem:[%s1124_s4] ss:$0 sm:$0xff]  ;;  %p769_p11 = scmp.ne.s32.totalorder %s1078_s7, %s768_s9  ;;  %s848_s22 = smov [#allocation8]  }
  0x6f   : > { %605 = vmatprep.subr.bf16.mxu1 %v845_v0  ;;  %s772_s13 = sshll.u32 %s848_s22, 4  ;;  %s773_s13 = int_to_ptr.vmem [resolvable:$false] %s772_s13 }
  0x70   : > { %601 = vmatpush3.bf16.msra.mxu0 %v600_v7  ;;  %p770_p1 = pnand %p769_p11, %p1139_p0  ;;  %s774_s29 = scalar_lea.vmem %s773_s13, 256 }
  0x71   : > { %p775_p7 = scmp.lt.s32.totalorder %s1078_s7, %s773_s13  ;;  %p776_p9 = scmp.lt.s32.totalorder %s774_s29, %s768_s9 }
  0x72   : > { %607 = vmatpush3.bf16.msra.mxu1 %v606_v14  ;;  %p771_p3 = pneg %p770_p1 }
  0x73   : > { %583 = vmatmul.mubr.msk.f32.vlgmr.msra.gmra.mrb[0].mxu0 %vm281_vm1, %v269_v8  ;;  %p777_p12 = por %p776_p9, %p775_p7 }
  0x75   : > { %p778_p2 = pnand %p777_p12, %p771_p3 }
 0x146   : > { %v351_v16 = vpop.f32.mrb[0].mxu0 }
 0x147   : > { %v352_v17 = vadd.f32 %v556_v15, %v351_v16  ;;  %v584_v18 = vpop.f32.mrb[1].mxu0 }
 0x149   : > { %680 = vtanh.f32 %v352_v17 }
 0x153   : > { %v681_v19 = vpop.eup %680 }
 0x154   : > { %594 = vmatmul.mubr.msk.f32.vlgmr.msra.gmra.mrb[0].mxu1 %vm281_vm1, %v681_v19 }
 0x227   : > { %v436_v21 = vpop.f32.mrb[0].mxu1 }
 0x228   : > { %v437_v22 = vadd.f32 %v558_v20, %v436_v21  ;;  %v595_v23 = vpop.f32.mrb[1].mxu1 }
 0x22a   : > { %440 = vst [vmem:[%s268_s28] sm:$0xff] %v437_v22 }
 0x22b   : > { %781 = shalt.err (!%p778_p2)
}
 0x22c   : > { %s782_s12 = scalar_lea.hbm %s1076_s15, 128  ;;  %s786_s26 = scalar_lea.hbm %s1125_s5, 256 }
 0x22d   : > { %p783_p13 = scmp.ne.s32.totalorder %s1076_s15, %s782_s12  ;;  %p787_p4 = scmp.lt.u32.totalorder %s1076_s15, %s1125_s5 }
 0x22e   : > { %p788_p5 = scmp.lt.u32.totalorder %s786_s26, %s782_s12  ;;  %p790_p11 = scmp.lt.u32.totalorder %s782_s12, %s1076_s15 }
 0x22f   : > { %p784_p6 = pnand %p783_p13, %p1139_p0 }
 0x230   : > { %p789_p8 = por %p788_p5, %p787_p4 }
 0x231   : > { %p785_p10 = pneg %p784_p6 }
 0x232   : > { %p791_p1 = por %p790_p11, %p789_p8 }
 0x234   : > { %p792_p3 = pnand %p791_p1, %p785_p10 }
 0x236   : > { %795 = shalt.err (!%p792_p3)
}
 0x237   : > { %618 = dma.vmem_to_hbm [thread:$0]  (%p1139_p0), %s1078_s7, 128, %s1076_s15, %s442_s16  }
 0x238 PF: > { %s467_s11 = sand.u32 1, %s826_s18   ;;  %p1140_p7 = scmp.ne.s32.totalorder %s1130_s25, 0 }
 0x239   : > { %p1141_p9 = scmp.ge.s32.totalorder %s838_s21, 2  ;;  %s468_s28 = scalar_lea.sflag [#allocation4], %s467_s11 }
 0x23b   : > { %p632_p12 = pnand %p1141_p9, %p1140_p7 }
 0x23d   : > { %821 = dma.done.wait (!%p632_p12), %s468_s28, 128  }
 0x23e   : > { %823 = vsyncadd (!%p632_p12), %s468_s28, 4294967168  ;;  %p19_p2 = scmp.ge.s32.totalorder %s989_s14, 4   ;;  %s1142_s18 = smov %s830_s19 }
 0x23f   : > { %s1143_s19 = smov %s834_s20  ;;  %s1144_s20 = smov %s1005_s27 }
 0x240   : > { %s1145_s21 = smov %s989_s14  ;;  %21 = sbr.rel (!%p19_p2) target bundleno = 6 (0x6), region = 93 }
 0x247   :  { %473 = vsyncpa [#allocation3], 1 }
 0x248   :  { %475 = vsyncpa [#allocation3 + $0x1], 1 }
 0x249   :  { %476 = vsyncpa [#allocation6], 1 }
 0x24a   :  { %477 = vsyncpa [#allocation4], 1 }
 0x24b   :  { %479 = vsyncpa [#allocation4 + $0x1], 1 }

</bundles_post_ra>
